<compile_context>
chip_gen: v6e
topology: v6e:2x2x1
jax: 0.10.0
libtpu: 0.0.40
codegen_flags: <defaults>
</compile_context>

<pallas_src>
import functools

import jax
import jax.numpy as jnp
import numpy as np
from jax import lax
from jax.experimental import pallas as pl
from jax.experimental.pallas import tpu as pltpu


# -----------------------------------------------------------------------------
# Kernels
# -----------------------------------------------------------------------------
def _mha_kernel_per_batch(x_ref, wqkv_ref, bqkv_ref, wo_ref, bo_ref, out_ref, *, EH):
    """One batch element per grid step (v7x: one batch element per TensorCore).

    x_ref   : (1, N, E)    tokens for this batch element
    wqkv_ref: (E, 3*EH)    fused+folded q/k/v projection (scale folded into Q)
    bqkv_ref: (1, 3*EH)    fused+folded q/k/v bias
    wo_ref  : (EH, EH)     out_proj weight (transposed)
    bo_ref  : (1, EH)      out_proj bias
    out_ref : (1, N, EH)   attention output (pre-rearrange), lane-dense
    """
    x = x_ref[0]                                                   # (N, E)

    # Fused Q/K/V projection: one MXU matmul (softmax scale already in weights).
    qkv = jnp.dot(x, wqkv_ref[...], preferred_element_type=jnp.float32)
    qkv = qkv + bqkv_ref[...]                                      # (N, 3*EH)
    q = qkv[:, 0 * EH:1 * EH]                                      # lane-aligned slices
    k = qkv[:, 1 * EH:2 * EH]
    v = qkv[:, 2 * EH:3 * EH]

    # scores = q . k^T (contract lane axis; no explicit transpose)
    s = lax.dot_general(q, k, (((1,), (1,)), ((), ())),
                        preferred_element_type=jnp.float32)        # (N, N)

    # softmax over keys (reciprocal on the EUP)
    p = jnp.exp(s - jnp.max(s, axis=-1, keepdims=True))
    attn = p * pl.reciprocal(jnp.sum(p, axis=-1, keepdims=True), approx=True)

    # context + output projection
    ctx = jnp.dot(attn, v, preferred_element_type=jnp.float32)     # (N, EH)
    out = jnp.dot(ctx, wo_ref[...], preferred_element_type=jnp.float32)
    out = out + bo_ref[...]                                        # (N, EH)

    out_ref[0] = out.astype(out_ref.dtype)


def _mha_kernel_all_batch(x_ref, wqkv_ref, bqkv_ref, wo_ref, bo_ref, out_ref, *, EH):
    """All batch elements in one grid step (single-TensorCore chips: v5e/v6e).

    x_ref   : (B, N, E)   out_ref : (B, N, EH)   (weights as above)
    """
    B, N, E = x_ref.shape
    x = x_ref[...].reshape(B * N, E)                               # stacked rows -> better MXU M-fill

    qkv = jnp.dot(x, wqkv_ref[...], preferred_element_type=jnp.float32)
    qkv = qkv + bqkv_ref[...]                                      # (B*N, 3*EH)
    q = qkv[:, 0 * EH:1 * EH].reshape(B, N, EH)
    k = qkv[:, 1 * EH:2 * EH].reshape(B, N, EH)
    v = qkv[:, 2 * EH:3 * EH].reshape(B, N, EH)

    s = jnp.einsum("bnd,bmd->bnm", q, k,
                   preferred_element_type=jnp.float32)             # (B, N, N)
    p = jnp.exp(s - jnp.max(s, axis=-1, keepdims=True))
    attn = p * pl.reciprocal(jnp.sum(p, axis=-1, keepdims=True), approx=True)

    ctx = jnp.einsum("bnm,bmd->bnd", attn, v,
                     preferred_element_type=jnp.float32)            # (B, N, EH)
    out = jnp.dot(ctx.reshape(B * N, EH), wo_ref[...],
                  preferred_element_type=jnp.float32)
    out = out + bo_ref[...]                                        # (B*N, EH)

    out_ref[...] = out.reshape(B, N, EH).astype(out_ref.dtype)


# -----------------------------------------------------------------------------
# One-time parameter preparation (hoisted out of the per-call path)
# -----------------------------------------------------------------------------
def prepare_params(params, num_heads, emb):
    """Fold the outer Linear into the MHA in_proj, fuse q/k/v, fold the softmax
    scale into the Q weights, and lay everything out lane-dense. Call ONCE."""
    E = emb
    EH = num_heads * E
    f32 = jnp.float32

    # (x @ W1.T + b1) @ W2.T + b2  ==  x @ (W2 @ W1).T + (W2 @ b1 + b2)
    def fold(w_outer, b_outer, w_in, b_in):
        return w_in @ w_outer, w_in @ b_outer + b_in               # (EH, E), (EH,)

    wq_in, wk_in, wv_in = jnp.split(params["in_proj_w"], 3, axis=0)
    bq_in, bk_in, bv_in = jnp.split(params["in_proj_b"], 3, axis=0)

    wq, bq = fold(params["wq"], params["bq"], wq_in, bq_in)
    wk, bk = fold(params["wk"], params["bk"], wk_in, bk_in)
    wv, bv = fold(params["wv"], params["bv"], wv_in, bv_in)

    # nn.MultiheadAttention(embed_dim=EH, num_heads=1) scales by 1/sqrt(EH):
    # fold it into the Q projection (one-time weight scale, exact).
    scale = 1.0 / float(np.sqrt(EH))
    wq = wq * scale
    bq = bq * scale

    wqkv = jnp.concatenate([wq, wk, wv], axis=0).T.astype(f32)     # (E, 3*EH)
    bqkv = jnp.concatenate([bq, bk, bv]).reshape(1, 3 * EH).astype(f32)
    wo_t = params["out_w"].T.astype(f32)                           # (EH, EH)
    bo = params["out_b"].reshape(1, EH).astype(f32)

    return {"wqkv": wqkv, "bqkv": bqkv, "wo_t": wo_t, "bo": bo,
            "emb": E, "num_heads": num_heads}


def _tensorcores_per_chip():
    """v7x has 2 TensorCores per chip; v5e/v6e have 1. Best-effort query."""
    try:
        info = pltpu.get_tpu_info()
        for attr in ("num_cores", "core_count", "tensorcores_per_chip",
                     "num_tensorcores", "cores_per_chip"):
            v = getattr(info, attr, None)
            if isinstance(v, int) and v > 0:
                return v
    except Exception:
        pass
    try:
        kind = jax.devices()[0].device_kind.lower()
        if "v7" in kind or "7x" in kind:
            return 2
    except Exception:
        pass
    return 1


# -----------------------------------------------------------------------------
# Per-call wrapper: pallas_call + output rearrange only
# -----------------------------------------------------------------------------
def multihead_attention(x, prepped, num_heads):
    """x: (B, N, E) float32. Returns (B, num_heads, N, E) like the PyTorch module."""
    B, N, E = x.shape
    EH = num_heads * E
    f32 = jnp.float32
    x = x.astype(f32)

    # v7x: one batch element per TensorCore. v5e/v6e: collapse the grid.
    per_batch_grid = (_tensorcores_per_chip() > 1) and (B > 1)

    def build(single_buffer_weights):
        wkw = {"pipeline_mode": pl.Buffered(1)} if single_buffer_weights else {}
        weight_specs = [
            pl.BlockSpec((E, 3 * EH), lambda b: (0, 0), **wkw),
            pl.BlockSpec((1, 3 * EH), lambda b: (0, 0), **wkw),
            pl.BlockSpec((EH, EH), lambda b: (0, 0), **wkw),
            pl.BlockSpec((1, EH), lambda b: (0, 0), **wkw),
        ]
        if per_batch_grid:
            grid = (B,)
            kernel = functools.partial(_mha_kernel_per_batch, EH=EH)
            x_spec = pl.BlockSpec((1, N, E), lambda b: (b, 0, 0))
            out_spec = pl.BlockSpec((1, N, EH), lambda b: (b, 0, 0))
        else:
            grid = (1,)
            kernel = functools.partial(_mha_kernel_all_batch, EH=EH)
            x_spec = pl.BlockSpec((B, N, E), lambda b: (0, 0, 0))
            out_spec = pl.BlockSpec((B, N, EH), lambda b: (0, 0, 0))

        grid_spec = pltpu.PrefetchScalarGridSpec(
            num_scalar_prefetch=0,
            grid=grid,
            in_specs=[x_spec] + weight_specs,
            out_specs=out_spec,
        )
        return pl.pallas_call(
            kernel,
            grid_spec=grid_spec,
            out_shape=jax.ShapeDtypeStruct((B, N, EH), f32),
            compiler_params=pltpu.CompilerParams(
                dimension_semantics=("parallel",)),
        )

    args = (x, prepped["wqkv"], prepped["bqkv"], prepped["wo_t"], prepped["bo"])
    try:
        att = build(single_buffer_weights=True)(*args)
    except Exception:
        # pipeline_mode=pl.Buffered(1) not supported on this JAX/libtpu combo:
        # fall back to default double-buffered specs (correctness identical).
        att = build(single_buffer_weights=False)(*args)

    # rearrange 'b n (h d) -> b h n d'  (wrapper glue; kernel output stays lane-dense)
    return att.reshape(B, N, num_heads, E).transpose(0, 2, 1, 3)


# -----------------------------------------------------------------------------
# Pure-JAX reference mirroring the PyTorch module op-for-op (no folding)
# -----------------------------------------------------------------------------
def multihead_attention_ref(x, params, num_heads):
    B, N, E = x.shape
    EH = num_heads * E

    q_lin = x @ params["wq"].T + params["bq"]
    k_lin = x @ params["wk"].T + params["bk"]
    v_lin = x @ params["wv"].T + params["bv"]

    wq_in, wk_in, wv_in = jnp.split(params["in_proj_w"], 3, axis=0)
    bq_in, bk_in, bv_in = jnp.split(params["in_proj_b"], 3, axis=0)

    q = q_lin @ wq_in.T + bq_in
    k = k_lin @ wk_in.T + bk_in
    v = v_lin @ wv_in.T + bv_in

    s = jnp.einsum("bnd,bmd->bnm", q, k) / jnp.sqrt(jnp.float32(EH))
    attn = jax.nn.softmax(s, axis=-1)
    ctx = jnp.einsum("bnm,bmd->bnd", attn, v)
    out = ctx @ params["out_w"].T + params["out_b"]
    return out.reshape(B, N, num_heads, E).transpose(0, 2, 1, 3)


# -----------------------------------------------------------------------------
# Main
# -----------------------------------------------------------------------------
if __name__ == "__main__":
    # channels (= num_heads) = 4, emb_size = 32, seq = 8, batch = 2  ->  EH = 128
    B, num_heads, E, N = 2, 4, 32, 8
    EH = num_heads * E

    key = jax.random.PRNGKey(0)
    ks = jax.random.split(key, 11)

    x = jax.random.normal(ks[0], (B, N, E), jnp.float32)

    params = {
        "wq": 0.1 * jax.random.normal(ks[1], (EH, E), jnp.float32),
        "bq": 0.1 * jax.random.normal(ks[2], (EH,), jnp.float32),
        "wk": 0.1 * jax.random.normal(ks[3], (EH, E), jnp.float32),
        "bk": 0.1 * jax.random.normal(ks[4], (EH,), jnp.float32),
        "wv": 0.1 * jax.random.normal(ks[5], (EH, E), jnp.float32),
        "bv": 0.1 * jax.random.normal(ks[6], (EH,), jnp.float32),
        "in_proj_w": 0.1 * jax.random.normal(ks[7], (3 * EH, EH), jnp.float32),
        "in_proj_b": 0.1 * jax.random.normal(ks[8], (3 * EH,), jnp.float32),
        "out_w": 0.1 * jax.random.normal(ks[9], (EH, EH), jnp.float32),
        "out_b": 0.1 * jax.random.normal(ks[10], (EH,), jnp.float32),
    }

    # One-time weight folding/fusion (hoisted out of the per-call path).
    prepped = jax.tree_util.tree_map(jax.block_until_ready,
                                     prepare_params(params, num_heads, E))

    out = jax.block_until_ready(multihead_attention(x, prepped, num_heads))
    ref = jax.block_until_ready(multihead_attention_ref(x, params, num_heads))

    assert out.shape == (B, num_heads, N, E)
    # Tolerance relaxed slightly vs. 1e-4: weight-fold reassociation plus the
    # EUP approximate reciprocal in the softmax introduce ~1e-4-level error.
    np.testing.assert_allclose(np.asarray(out), np.asarray(ref),
                               rtol=2e-3, atol=2e-3)

    print("KERNEL_OK")
</pallas_src>

<mosaic_0001>
module attributes {stable_mosaic.version = 11 : i64} {
  func.func @_mha_kernel_all_batch(%arg0: i32, %arg1: memref<2x8x32xf32, #tpu.memory_space<vmem>>, %arg2: memref<32x384xf32, #tpu.memory_space<vmem>>, %arg3: memref<1x384xf32, #tpu.memory_space<vmem>>, %arg4: memref<128x128xf32, #tpu.memory_space<vmem>>, %arg5: memref<1x128xf32, #tpu.memory_space<vmem>>, %arg6: memref<2x8x128xf32, #tpu.memory_space<vmem>>) attributes {dimension_semantics = [#tpu.dimension_semantics<parallel>], iteration_bounds = array<i64: 1>, scalar_prefetch = 0 : i64, scratch_operands = 0 : i64, tpu.core_type = #tpu.core_type<tc>, window_params = [{pipeline_mode = #tpu.pipeline_mode<synchronous>, transform_indices = @transform_0, window_bounds = array<i64: 2, 8, 32>}, {pipeline_mode = #tpu.pipeline_mode<synchronous>, transform_indices = @transform_1, window_bounds = array<i64: 32, 384>}, {pipeline_mode = #tpu.pipeline_mode<synchronous>, transform_indices = @transform_2, window_bounds = array<i64: 1, 384>}, {pipeline_mode = #tpu.pipeline_mode<synchronous>, transform_indices = @transform_3, window_bounds = array<i64: 128, 128>}, {pipeline_mode = #tpu.pipeline_mode<synchronous>, transform_indices = @transform_4, window_bounds = array<i64: 1, 128>}, {pipeline_mode = #tpu.pipeline_mode<synchronous>, transform_indices = @transform_5, window_bounds = array<i64: 2, 8, 128>}]} {
    %c0 = arith.constant 0 : index
    %c0_0 = arith.constant 0 : index
    %c0_1 = arith.constant 0 : index
    %0 = vector.load %arg1[%c0, %c0_0, %c0_1] : memref<2x8x32xf32, #tpu.memory_space<vmem>>, vector<2x8x32xf32>
    %1 = vector.shape_cast %0 : vector<2x8x32xf32> to vector<16x32xf32>
    %c0_2 = arith.constant 0 : index
    %c0_3 = arith.constant 0 : index
    %2 = vector.load %arg2[%c0_2, %c0_3] : memref<32x384xf32, #tpu.memory_space<vmem>>, vector<32x384xf32>
    %cst = arith.constant dense<0.000000e+00> : vector<16x384xf32>
    %3 = tpu.matmul %1, %2, %cst {dimension_numbers = #tpu.dot_dimension_numbers<[1], [0], [0], [1], [0, 0, 1, 1], [], []>} : vector<16x32xf32>, vector<32x384xf32>, vector<16x384xf32> -> vector<16x384xf32>
    %c0_4 = arith.constant 0 : index
    %c0_5 = arith.constant 0 : index
    %4 = vector.load %arg3[%c0_4, %c0_5] : memref<1x384xf32, #tpu.memory_space<vmem>>, vector<1x384xf32>
    %5 = vector.broadcast %4 : vector<1x384xf32> to vector<16x384xf32>
    %6 = arith.addf %3, %5 : vector<16x384xf32>
    %7 = vector.extract_strided_slice %6 {offsets = [0, 0], sizes = [16, 128], strides = [1, 1]} : vector<16x384xf32> to vector<16x128xf32>
    %8 = vector.shape_cast %7 : vector<16x128xf32> to vector<2x8x128xf32>
    %9 = vector.extract_strided_slice %6 {offsets = [0, 128], sizes = [16, 128], strides = [1, 1]} : vector<16x384xf32> to vector<16x128xf32>
    %10 = vector.shape_cast %9 : vector<16x128xf32> to vector<2x8x128xf32>
    %11 = vector.extract_strided_slice %6 {offsets = [0, 256], sizes = [16, 128], strides = [1, 1]} : vector<16x384xf32> to vector<16x128xf32>
    %12 = vector.shape_cast %11 : vector<16x128xf32> to vector<2x8x128xf32>
    "tpu.trace_start"() <{level = 10 : i32, message = "bnd,bmd->bnm"}> : () -> ()
    %cst_6 = arith.constant dense<0.000000e+00> : vector<2x8x8xf32>
    %13 = tpu.matmul %8, %10, %cst_6 {dimension_numbers = #tpu.dot_dimension_numbers<[2], [2], [1], [1], [0, 0, 0, 1, 1, 1], [0], [0]>} : vector<2x8x128xf32>, vector<2x8x128xf32>, vector<2x8x8xf32> -> vector<2x8x8xf32>
    "tpu.trace_stop"() : () -> ()
    %cst_7 = arith.constant dense<0xFF800000> : vector<2x8xf32>
    %14 = vector.multi_reduction <maximumf>, %13, %cst_7 [2] : vector<2x8x8xf32> to vector<2x8xf32>
    %15 = vector.shape_cast %14 : vector<2x8xf32> to vector<2x8x1xf32>
    %16 = vector.broadcast %15 : vector<2x8x1xf32> to vector<2x8x8xf32>
    %17 = arith.subf %13, %16 : vector<2x8x8xf32>
    %18 = math.exp %17 : vector<2x8x8xf32>
    %cst_8 = arith.constant dense<0.000000e+00> : vector<2x8xf32>
    %19 = vector.multi_reduction <add>, %18, %cst_8 [2] : vector<2x8x8xf32> to vector<2x8xf32>
    %20 = vector.shape_cast %19 : vector<2x8xf32> to vector<2x8x1xf32>
    %21 = tpu.reciprocal %20 {approx = true} : vector<2x8x1xf32> -> vector<2x8x1xf32>
    %22 = vector.broadcast %21 : vector<2x8x1xf32> to vector<2x8x8xf32>
    %23 = arith.mulf %18, %22 : vector<2x8x8xf32>
    "tpu.trace_start"() <{level = 10 : i32, message = "bnm,bmd->bnd"}> : () -> ()
    %cst_9 = arith.constant dense<0.000000e+00> : vector<2x8x128xf32>
    %24 = tpu.matmul %23, %12, %cst_9 {dimension_numbers = #tpu.dot_dimension_numbers<[2], [1], [1], [2], [0, 0, 0, 1, 1, 2], [0], [0]>} : vector<2x8x8xf32>, vector<2x8x128xf32>, vector<2x8x128xf32> -> vector<2x8x128xf32>
    "tpu.trace_stop"() : () -> ()
    %25 = vector.shape_cast %24 : vector<2x8x128xf32> to vector<16x128xf32>
    %c0_10 = arith.constant 0 : index
    %c0_11 = arith.constant 0 : index
    %26 = vector.load %arg4[%c0_10, %c0_11] : memref<128x128xf32, #tpu.memory_space<vmem>>, vector<128x128xf32>
    %cst_12 = arith.constant dense<0.000000e+00> : vector<16x128xf32>
    %27 = tpu.matmul %25, %26, %cst_12 {dimension_numbers = #tpu.dot_dimension_numbers<[1], [0], [0], [1], [0, 0, 1, 1], [], []>} : vector<16x128xf32>, vector<128x128xf32>, vector<16x128xf32> -> vector<16x128xf32>
    %c0_13 = arith.constant 0 : index
    %c0_14 = arith.constant 0 : index
    %28 = vector.load %arg5[%c0_13, %c0_14] : memref<1x128xf32, #tpu.memory_space<vmem>>, vector<1x128xf32>
    %29 = vector.broadcast %28 : vector<1x128xf32> to vector<16x128xf32>
    %30 = arith.addf %27, %29 : vector<16x128xf32>
    %31 = vector.shape_cast %30 : vector<16x128xf32> to vector<2x8x128xf32>
    %c0_15 = arith.constant 0 : index
    %c0_16 = arith.constant 0 : index
    %c0_17 = arith.constant 0 : index
    %32 = vector.load %arg6[%c0_15, %c0_16, %c0_17] : memref<2x8x128xf32, #tpu.memory_space<vmem>>, vector<2x8x128xf32>
    tpu.vector_store %arg6[%c0_15, %c0_16, %c0_17], %31 {strides = array<i32>} : memref<2x8x128xf32, #tpu.memory_space<vmem>>, vector<2x8x128xf32>,
    return
  }
  func.func @transform_0(%arg0: i32) -> (i32, i32, i32) {
    %c0_i32 = arith.constant 0 : i32
    %c0_i32_0 = arith.constant 0 : i32
    %c0_i32_1 = arith.constant 0 : i32
    %c0_i32_2 = arith.constant 0 : i32
    return %c0_i32, %c0_i32_0, %c0_i32_1 : i32, i32, i32
  }
  func.func @transform_1(%arg0: i32) -> (i32, i32) {
    %c0_i32 = arith.constant 0 : i32
    %c0_i32_0 = arith.constant 0 : i32
    %c0_i32_1 = arith.constant 0 : i32
    return %c0_i32, %c0_i32_0 : i32, i32
  }
  func.func @transform_2(%arg0: i32) -> (i32, i32) {
    %c0_i32 = arith.constant 0 : i32
    %c0_i32_0 = arith.constant 0 : i32
    %c0_i32_1 = arith.constant 0 : i32
    return %c0_i32, %c0_i32_0 : i32, i32
  }
  func.func @transform_3(%arg0: i32) -> (i32, i32) {
    %c0_i32 = arith.constant 0 : i32
    %c0_i32_0 = arith.constant 0 : i32
    %c0_i32_1 = arith.constant 0 : i32
    return %c0_i32, %c0_i32_0 : i32, i32
  }
  func.func @transform_4(%arg0: i32) -> (i32, i32) {
    %c0_i32 = arith.constant 0 : i32
    %c0_i32_0 = arith.constant 0 : i32
    %c0_i32_1 = arith.constant 0 : i32
    return %c0_i32, %c0_i32_0 : i32, i32
  }
  func.func @transform_5(%arg0: i32) -> (i32, i32, i32) {
    %c0_i32 = arith.constant 0 : i32
    %c0_i32_0 = arith.constant 0 : i32
    %c0_i32_1 = arith.constant 0 : i32
    %c0_i32_2 = arith.constant 0 : i32
    return %c0_i32, %c0_i32_0, %c0_i32_1 : i32, i32, i32
  }
}

module attributes {stable_mosaic.version = 11 : i64} {
  func.func @_mha_kernel_all_batch(%arg0: i32, %arg1: memref<2x8x32xf32, #tpu.memory_space<vmem>>, %arg2: memref<32x384xf32, #tpu.memory_space<vmem>>, %arg3: memref<1x384xf32, #tpu.memory_space<vmem>>, %arg4: memref<128x128xf32, #tpu.memory_space<vmem>>, %arg5: memref<1x128xf32, #tpu.memory_space<vmem>>, %arg6: memref<2x8x128xf32, #tpu.memory_space<vmem>>) attributes {dimension_semantics = [#tpu.dimension_semantics<parallel>], iteration_bounds = array<i64: 1>, scalar_prefetch = 0 : i64, scratch_operands = 0 : i64, tpu.core_type = #tpu.core_type<tc>, window_params = [{pipeline_mode = #tpu.pipeline_mode<synchronous>, transform_indices = @transform_0, window_bounds = array<i64: 2, 8, 32>}, {pipeline_mode = #tpu.pipeline_mode<synchronous>, transform_indices = @transform_1, window_bounds = array<i64: 32, 384>}, {pipeline_mode = #tpu.pipeline_mode<synchronous>, transform_indices = @transform_2, window_bounds = array<i64: 1, 384>}, {pipeline_mode = #tpu.pipeline_mode<synchronous>, transform_indices = @transform_3, window_bounds = array<i64: 128, 128>}, {pipeline_mode = #tpu.pipeline_mode<synchronous>, transform_indices = @transform_4, window_bounds = array<i64: 1, 128>}, {pipeline_mode = #tpu.pipeline_mode<synchronous>, transform_indices = @transform_5, window_bounds = array<i64: 2, 8, 128>}]} {
    %c0 = arith.constant 0 : index
    %c0_0 = arith.constant 0 : index
    %c0_1 = arith.constant 0 : index
    %0 = vector.load %arg1[%c0, %c0_0, %c0_1] : memref<2x8x32xf32, #tpu.memory_space<vmem>>, vector<2x8x32xf32>
    %1 = vector.shape_cast %0 : vector<2x8x32xf32> to vector<16x32xf32>
    %c0_2 = arith.constant 0 : index
    %c0_3 = arith.constant 0 : index
    %2 = vector.load %arg2[%c0_2, %c0_3] : memref<32x384xf32, #tpu.memory_space<vmem>>, vector<32x384xf32>
    %cst = arith.constant dense<0.000000e+00> : vector<16x384xf32>
    %3 = tpu.matmul %1, %2, %cst {dimension_numbers = #tpu.dot_dimension_numbers<[1], [0], [0], [1], [0, 0, 1, 1], [], []>} : vector<16x32xf32>, vector<32x384xf32>, vector<16x384xf32> -> vector<16x384xf32>
    %c0_4 = arith.constant 0 : index
    %c0_5 = arith.constant 0 : index
    %4 = vector.load %arg3[%c0_4, %c0_5] : memref<1x384xf32, #tpu.memory_space<vmem>>, vector<1x384xf32>
    %5 = vector.broadcast %4 : vector<1x384xf32> to vector<16x384xf32>
    %6 = arith.addf %3, %5 : vector<16x384xf32>
    %7 = vector.extract_strided_slice %6 {offsets = [0, 0], sizes = [16, 128], strides = [1, 1]} : vector<16x384xf32> to vector<16x128xf32>
    %8 = vector.shape_cast %7 : vector<16x128xf32> to vector<2x8x128xf32>
    %9 = vector.extract_strided_slice %6 {offsets = [0, 128], sizes = [16, 128], strides = [1, 1]} : vector<16x384xf32> to vector<16x128xf32>
    %10 = vector.shape_cast %9 : vector<16x128xf32> to vector<2x8x128xf32>
    %11 = vector.extract_strided_slice %6 {offsets = [0, 256], sizes = [16, 128], strides = [1, 1]} : vector<16x384xf32> to vector<16x128xf32>
    %12 = vector.shape_cast %11 : vector<16x128xf32> to vector<2x8x128xf32>
    "tpu.trace_start"() <{level = 10 : i32, message = "bnd,bmd->bnm"}> : () -> ()
    %cst_6 = arith.constant dense<0.000000e+00> : vector<2x8x8xf32>
    %13 = tpu.matmul %8, %10, %cst_6 {dimension_numbers = #tpu.dot_dimension_numbers<[2], [2], [1], [1], [0, 0, 0, 1, 1, 1], [0], [0]>} : vector<2x8x128xf32>, vector<2x8x128xf32>, vector<2x8x8xf32> -> vector<2x8x8xf32>
    "tpu.trace_stop"() : () -> ()
    %cst_7 = arith.constant dense<0xFF800000> : vector<2x8xf32>
    %14 = vector.multi_reduction <maximumf>, %13, %cst_7 [2] : vector<2x8x8xf32> to vector<2x8xf32>
    %15 = vector.shape_cast %14 : vector<2x8xf32> to vector<2x8x1xf32>
    %16 = vector.broadcast %15 : vector<2x8x1xf32> to vector<2x8x8xf32>
    %17 = arith.subf %13, %16 : vector<2x8x8xf32>
    %18 = math.exp %17 : vector<2x8x8xf32>
    %cst_8 = arith.constant dense<0.000000e+00> : vector<2x8xf32>
    %19 = vector.multi_reduction <add>, %18, %cst_8 [2] : vector<2x8x8xf32> to vector<2x8xf32>
    %20 = vector.shape_cast %19 : vector<2x8xf32> to vector<2x8x1xf32>
    %21 = tpu.reciprocal %20 {approx = true} : vector<2x8x1xf32> -> vector<2x8x1xf32>
    %22 = vector.broadcast %21 : vector<2x8x1xf32> to vector<2x8x8xf32>
    %23 = arith.mulf %18, %22 : vector<2x8x8xf32>
    "tpu.trace_start"() <{level = 10 : i32, message = "bnm,bmd->bnd"}> : () -> ()
    %cst_9 = arith.constant dense<0.000000e+00> : vector<2x8x128xf32>
    %24 = tpu.matmul %23, %12, %cst_9 {dimension_numbers = #tpu.dot_dimension_numbers<[2], [1], [1], [2], [0, 0, 0, 1, 1, 2], [0], [0]>} : vector<2x8x8xf32>, vector<2x8x128xf32>, vector<2x8x128xf32> -> vector<2x8x128xf32>
    "tpu.trace_stop"() : () -> ()
    %25 = vector.shape_cast %24 : vector<2x8x128xf32> to vector<16x128xf32>
    %c0_10 = arith.constant 0 : index
    %c0_11 = arith.constant 0 : index
    %26 = vector.load %arg4[%c0_10, %c0_11] : memref<128x128xf32, #tpu.memory_space<vmem>>, vector<128x128xf32>
    %cst_12 = arith.constant dense<0.000000e+00> : vector<16x128xf32>
    %27 = tpu.matmul %25, %26, %cst_12 {dimension_numbers = #tpu.dot_dimension_numbers<[1], [0], [0], [1], [0, 0, 1, 1], [], []>} : vector<16x128xf32>, vector<128x128xf32>, vector<16x128xf32> -> vector<16x128xf32>
    %c0_13 = arith.constant 0 : index
    %c0_14 = arith.constant 0 : index
    %28 = vector.load %arg5[%c0_13, %c0_14] : memref<1x128xf32, #tpu.memory_space<vmem>>, vector<1x128xf32>
    %29 = vector.broadcast %28 : vector<1x128xf32> to vector<16x128xf32>
    %30 = arith.addf %27, %29 : vector<16x128xf32>
    %31 = vector.shape_cast %30 : vector<16x128xf32> to vector<2x8x128xf32>
    %c0_15 = arith.constant 0 : index
    %c0_16 = arith.constant 0 : index
    %c0_17 = arith.constant 0 : index
    %32 = vector.load %arg6[%c0_15, %c0_16, %c0_17] : memref<2x8x128xf32, #tpu.memory_space<vmem>>, vector<2x8x128xf32>
    tpu.vector_store %arg6[%c0_15, %c0_16, %c0_17], %31 {strides = array<i32>} : memref<2x8x128xf32, #tpu.memory_space<vmem>>, vector<2x8x128xf32>,
    return
  }
  func.func @transform_0(%arg0: i32) -> (i32, i32, i32) {
    %c0_i32 = arith.constant 0 : i32
    %c0_i32_0 = arith.constant 0 : i32
    %c0_i32_1 = arith.constant 0 : i32
    %c0_i32_2 = arith.constant 0 : i32
    return %c0_i32, %c0_i32_0, %c0_i32_1 : i32, i32, i32
  }
  func.func @transform_1(%arg0: i32) -> (i32, i32) {
    %c0_i32 = arith.constant 0 : i32
    %c0_i32_0 = arith.constant 0 : i32
    %c0_i32_1 = arith.constant 0 : i32
    return %c0_i32, %c0_i32_0 : i32, i32
  }
  func.func @transform_2(%arg0: i32) -> (i32, i32) {
    %c0_i32 = arith.constant 0 : i32
    %c0_i32_0 = arith.constant 0 : i32
    %c0_i32_1 = arith.constant 0 : i32
    return %c0_i32, %c0_i32_0 : i32, i32
  }
  func.func @transform_3(%arg0: i32) -> (i32, i32) {
    %c0_i32 = arith.constant 0 : i32
    %c0_i32_0 = arith.constant 0 : i32
    %c0_i32_1 = arith.constant 0 : i32
    return %c0_i32, %c0_i32_0 : i32, i32
  }
  func.func @transform_4(%arg0: i32) -> (i32, i32) {
    %c0_i32 = arith.constant 0 : i32
    %c0_i32_0 = arith.constant 0 : i32
    %c0_i32_1 = arith.constant 0 : i32
    return %c0_i32, %c0_i32_0 : i32, i32
  }
  func.func @transform_5(%arg0: i32) -> (i32, i32, i32) {
    %c0_i32 = arith.constant 0 : i32
    %c0_i32_0 = arith.constant 0 : i32
    %c0_i32_1 = arith.constant 0 : i32
    %c0_i32_2 = arith.constant 0 : i32
    return %c0_i32, %c0_i32_0, %c0_i32_1 : i32, i32, i32
  }
}

</mosaic_0001>

<bundles_post_ra>
// kernel: tpu_custom_call.1
= control target key start
LH: loop header
LB: loop body
LE: loop exit
PB: predicated region body
PF: predicated region fallthrough
CT: control target
= control target key end

     0   :  { %10 = vsyncpa [#allocation3], 0  ;;  %s982_s0 = inlined_call_operand.hbm [shape: f32[2,8,32], index: 0, kind: input, shape index: {}]   ;;  %s983_s1 = inlined_call_operand.hbm [shape: f32[32,384], index: 1, kind: input, shape index: {}]   ;;  %s984_s2 = inlined_call_operand.vmem [shape: f32[1,384], index: 2, kind: input, shape index: {}]   ;;  %s985_s3 = inlined_call_operand.hbm [shape: f32[128,128], index: 3, kind: input, shape index: {}]   ;;  %s986_s4 = inlined_call_operand.vmem [shape: f32[1,128], index: 4, kind: input, shape index: {}]   ;;  %s987_s5 = inlined_call_operand.hbm [shape: f32[2,8,128], index: 5, kind: output, shape index: {}]  }
   0x1   :  { %11 = vsyncpa [#allocation6], 0 }
   0x2   :  { %12 = vsyncpa [#allocation4], 0  ;;  %s888_s18 = smov [#allocation5]  }
   0x3   :  { %s30_s19 = sshll.u32 %s888_s18, 4  ;;  %s31_s19 = int_to_ptr.vmem [resolvable:$true] %s30_s19 }
   0x4   :  { %s810_s20 = scalar_lea.vmem %s31_s19, 1536  ;;  %p815_p1 = scmp.lt.s32.totalorder %s31_s19, %s31_s19 }
   0x5   :  { %p811_p0 = scmp.ne.s32.totalorder %s31_s19, %s810_s20  ;;  %p816_p2 = scmp.lt.s32.totalorder %s810_s20, %s810_s20 }
   0x7   :  { %p817_p3 = por %p816_p2, %p815_p1 }
   0x9   :  { %p818_p4 = pnand %p817_p3, %p811_p0 }
   0xb   :  { %821 = shalt.err (!%p818_p4)
}
   0xc   :  { %s889_s21 = smov 384   ;;  %s890_s22 = smov 24  }
   0xd   :  { %36 = dma.hbm_to_vmem [thread:$0]  %s983_s1, 1536, %s31_s19, [#allocation6], %s889_s21, %s889_s21, %s890_s22  }
   0xe   :  { %s891_s25 = smov [#allocation2]  }
   0xf   :  { %s18_s26 = sshll.u32 %s891_s25, 4  ;;  %s19_s26 = int_to_ptr.vmem [resolvable:$true] %s18_s26 }
  0x10   :  { %s830_s27 = scalar_lea.vmem %s19_s26, 256  ;;  %p835_p6 = scmp.lt.s32.totalorder %s19_s26, %s19_s26 }
  0x11   :  { %p831_p5 = scmp.ne.s32.totalorder %s19_s26, %s830_s27  ;;  %p836_p7 = scmp.lt.s32.totalorder %s830_s27, %s830_s27 }
  0x13   :  { %p837_p8 = por %p836_p7, %p835_p6 }
  0x15   :  { %p838_p9 = pnand %p837_p8, %p831_p5 }
  0x17   :  { %841 = shalt.err (!%p838_p9)
}
  0x18   :  { %s892_s28 = smov 128   ;;  %s893_s29 = smov 8  }
  0x19   :  { %24 = dma.hbm_to_vmem [thread:$0]  %s982_s0, 256, %s19_s26, [#allocation3], %s892_s28, %s892_s28, %s893_s29  }
  0x1a   :  { %s894_s1 = smov [#allocation7]  }
  0x1b   :  { %s44_s7 = sshll.u32 %s894_s1, 4  ;;  %s45_s7 = int_to_ptr.vmem [resolvable:$true] %s44_s7 }
  0x1c   :  { %s850_s8 = scalar_lea.vmem %s45_s7, 2048  ;;  %p855_p11 = scmp.lt.s32.totalorder %s45_s7, %s45_s7 }
  0x1d   :  { %p851_p10 = scmp.ne.s32.totalorder %s45_s7, %s850_s8  ;;  %p856_p12 = scmp.lt.s32.totalorder %s850_s8, %s850_s8 }
  0x1f   :  { %p857_p13 = por %p856_p12, %p855_p11 }
  0x21   :  { %p858_p0 = pnand %p857_p13, %p851_p10 }
  0x23   :  { %861 = shalt.err (!%p858_p0)
}
  0x24   :  { %50 = dma.hbm_to_vmem [thread:$0]  %s985_s3, 2048, %s45_s7, [#allocation6], %s892_s28, %s892_s28, %s893_s29  }
  0x25   :  { %882 = dma.done.wait [#allocation3], 256  }
  0x26   :  { %883 = vsyncadd [#allocation3], 4294967040 }
  0x27   :  { %884 = dma.done.wait [#allocation6], 3584  }
  0x28   :  { %885 = vsyncadd [#allocation6], 4294963712  ;;  %v895_v0 = vmov 0.0   ;;  %v74_v1 = vld [vmem:[#allocation5 + $0x50] sm:$0xff]  ;;  %v73_v2 = vld [vmem:[#allocation5 + $0x48] sm:$0xff]  ;;  %vm93_vm0 = vcmask 261120   ;;  %v78_v15 = vlaneseq }
  0x29   :  { %164 = vmatprep.mubr.f32.mxu0 %v895_v0  ;;  %v71_v3 = vld [vmem:[#allocation5 + $0x38] sm:$0xff]  ;;  %124 = vmatprep.subr.mxu0 %v74_v1  ;;  %v70_v4 = vld [vmem:[#allocation5 + $0x30] sm:$0xff]  ;;  %v68_v5 = vld [vmem:[#allocation5 + $0x20] sm:$0xff]  ;;  %vm896_vm1 = vmmov 0   ;;  %vm392_vm2 = vcmask 64512   ;;  %s897_s12 = smov [#allocation8]  }
  0x2a   :  { %125 = vmatpush1.msra.mxu0 %v73_v2  ;;  %v67_v6 = vld [vmem:[#allocation5 + $0x18] sm:$0xff]  ;;  %v65_v7 = vld [vmem:[#allocation5 + $0x8] sm:$0xff]  ;;  %v64_v8 = vld [vmem:[#allocation5] sm:$0xff]  ;;  %v79_v16 = vshrl.u32 %v78_v15, 7  ;;  %s666_s13 = sshll.u32 %s897_s12, 4  ;;  %s667_s13 = int_to_ptr.vmem [resolvable:$true] %s666_s13 }
  0x2b   :  { %126 = vmatprep.subr.mxu0 %v71_v3  ;;  %v62_v9 = vld [vmem:[#allocation2] sm:$0xff]  ;;  %v75_v10 = vld [vmem:[#allocation5 + $0x58] sm:$0xff]  ;;  %v72_v11 = vld [vmem:[#allocation5 + $0x40] sm:$0xff]  ;;  %s862_s14 = scalar_lea.vmem %s667_s13, 256  ;;  %p867_p2 = scmp.lt.s32.totalorder %s667_s13, %s667_s13 }
  0x2c   :  { %127 = vmatpush1.msra.mxu0 %v70_v4  ;;  %v63_v12 = vld [vmem:[#allocation2 + $0x8] sm:$0xff]  ;;  %v69_v13 = vld [vmem:[#allocation5 + $0x28] sm:$0xff]  ;;  %v66_v14 = vld [vmem:[#allocation5 + $0x10] sm:$0xff]  ;;  %v84_v17 = vsub.s32 1, %v79_v16  ;;  %v80_v19 = vsub.s32 0, %v79_v16  ;;  %v88_v30 = vsub.s32 2, %v79_v16  ;;  %p863_p1 = scmp.ne.s32.totalorder %s667_s13, %s862_s14  ;;  %p868_p3 = scmp.lt.s32.totalorder %s862_s14, %s862_s14 }
  0x2d   :  { %128 = vmatprep.subr.mxu0 %v68_v5  ;;  %v76_v18 = vld [vmem:[%s984_s2] sm:$0x7]  ;;  %v576_v52 = vld [vmem:[#allocation7 + $0x78] sm:$0xff]  ;;  %v574_v54 = vld [vmem:[#allocation7 + $0x68] sm:$0xff] }
  0x2e   :  { %129 = vmatpush1.msra.mxu0 %v67_v6  ;;  %v85_v20 = vrot.slane %v76_v18, %v84_v17  ;;  %v81_v22 = vrot.slane %v76_v18, %v80_v19  ;;  %v89_v31 = vrot.slane %v76_v18, %v88_v30  ;;  %v575_v53 = vld [vmem:[#allocation7 + $0x70] sm:$0xff]  ;;  %749 = vmatprep.subr.mxu1 %v576_v52  ;;  %v573_v55 = vld [vmem:[#allocation7 + $0x60] sm:$0xff]  ;;  %v572_v56 = vld [vmem:[#allocation7 + $0x58] sm:$0xff]  ;;  %p869_p4 = por %p868_p3, %p867_p2 }
  0x2f   :  { %130 = vmatprep.subr.mxu0 %v65_v7  ;;  %750 = vmatpush3.msra.mxu1 %v576_v52  ;;  %v571_v57 = vld [vmem:[#allocation7 + $0x50] sm:$0xff]  ;;  %v570_v58 = vld [vmem:[#allocation7 + $0x48] sm:$0xff]  ;;  %v569_v59 = vld [vmem:[#allocation7 + $0x40] sm:$0xff] }
  0x30   :  { %131 = vmatpush1.msra.mxu0 %v64_v8  ;;  %751 = vmatprep.subr.mxu1 %v575_v53  ;;  %v568_v60 = vld [vmem:[#allocation7 + $0x38] sm:$0xff]  ;;  %v567_v61 = vld [vmem:[#allocation7 + $0x30] sm:$0xff]  ;;  %v566_v62 = vld [vmem:[#allocation7 + $0x28] sm:$0xff]  ;;  %p870_p5 = pnand %p869_p4, %p863_p1 }
  0x31   :  { %679 = vmatmul.mubr.msk.f32.vlgmr.msra.gmra.mxu0 %vm93_vm0, %v62_v9  ;;  %718 = vmatprep.subr.mxu0 %v75_v10  ;;  %v565_v63 = vld [vmem:[#allocation7 + $0x20] sm:$0xff]  ;;  %v564_v1 = vld [vmem:[#allocation7 + $0x18] sm:$0xff]  ;;  %v563_v2 = vld [vmem:[#allocation7 + $0x10] sm:$0xff] }
  0x32   :  { %170 = vmatprep.mubr.f32.mxu0 %v895_v0  ;;  %719 = vmatpush3.msra.mxu0 %v75_v10  ;;  %v561_v10 = vld [vmem:[#allocation7] sm:$0xff]  ;;  %v685_v15 = vld [vmem:[%s986_s4] ss:$0 sm:$0xff] }
  0x33   :  { %720 = vmatprep.subr.mxu0 %v72_v11  ;;  %752 = vmatpush3.msra.mxu1 %v575_v53 }
  0x34   :  { %721 = vmatpush3.msra.mxu0 %v72_v11  ;;  %753 = vmatprep.subr.mxu1 %v574_v54 }
  0x35   :  { %680 = vmatmul.mubr.msk.f32.gmra.mxu0 %vm93_vm0, %v63_v12  ;;  %722 = vmatprep.subr.mxu0 %v69_v13 }
  0x36   :  { %723 = vmatpush3.msra.mxu0 %v69_v13  ;;  %726 = vmatprep.mubr.msk.f32.mxu0 %vm93_vm0, %v62_v9  ;;  %v562_v9 = vld [vmem:[#allocation7 + $0x8] sm:$0xff] }
  0x37   :  { %724 = vmatprep.subr.mxu0 %v66_v14  ;;  %754 = vmatpush3.msra.mxu1 %v574_v54 }
  0x38   :  { %725 = vmatpush3.msra.mxu0 %v66_v14  ;;  %755 = vmatprep.subr.mxu1 %v573_v55 }
  0x39   :  { %727 = vmatmul.mubr.msk.f32.vlgmr.msra.gmra.mxu0 %vm93_vm0, %v63_v12  ;;  %729 = vmatprep.subr.mxu0 %v895_v0 }
  0x3a   :  { %731 = vmatprep.mubr.msk.f32.mxu0 %vm896_vm1, %v895_v0  ;;  %756 = vmatpush3.msra.mxu1 %v573_v55 }
  0x3b   :  { %757 = vmatprep.subr.mxu1 %v572_v56 }
  0x3c   :  { %758 = vmatpush3.msra.mxu1 %v572_v56 }
  0x3d   :  { %759 = vmatprep.subr.mxu1 %v571_v57 }
  0x3e   :  { %760 = vmatpush3.msra.mxu1 %v571_v57 }
  0x3f   :  { %761 = vmatprep.subr.mxu1 %v570_v58 }
  0x40   :  { %762 = vmatpush3.msra.mxu1 %v570_v58 }
  0x41   :  { %763 = vmatprep.subr.mxu1 %v569_v59 }
  0x42   :  { %764 = vmatpush3.msra.mxu1 %v569_v59 }
  0x43   :  { %765 = vmatprep.subr.mxu1 %v568_v60 }
  0x44   :  { %766 = vmatpush3.msra.mxu1 %v568_v60 }
  0x45   :  { %767 = vmatprep.subr.mxu1 %v567_v61 }
  0x46   :  { %768 = vmatpush3.msra.mxu1 %v567_v61 }
  0x47   :  { %769 = vmatprep.subr.mxu1 %v566_v62 }
  0x48   :  { %770 = vmatpush3.msra.mxu1 %v566_v62 }
  0x49   :  { %771 = vmatprep.subr.mxu1 %v565_v63 }
  0x4a   :  { %772 = vmatpush3.msra.mxu1 %v565_v63 }
  0x4b   :  { %773 = vmatprep.subr.mxu1 %v564_v1 }
  0x4c   :  { %774 = vmatpush3.msra.mxu1 %v564_v1 }
  0x4d   :  { %775 = vmatprep.subr.mxu1 %v563_v2 }
  0x4e   :  { %776 = vmatpush3.msra.mxu1 %v563_v2 }
  0x4f   :  { %777 = vmatprep.subr.mxu1 %v562_v9 }
  0x50   :  { %778 = vmatpush3.msra.mxu1 %v562_v9 }
  0x51   :  { %779 = vmatprep.subr.mxu1 %v561_v10 }
  0x52   :  { %780 = vmatpush3.msra.mxu1 %v561_v10 }
  0xf1   :  { %v166_v21 = vpop.f32.mrf.mxu0 }
  0xf2   :  { %v167_v26 = vadd.f32 %v166_v21, %v81_v22 }
  0xf3   :  { %v168_v23 = vpop.f32.mrf.mxu0 }
  0xf4   :  { %v169_v24 = vadd.f32 %v168_v23, %v85_v20 }
  0xf5   :  { %v172_v25 = vpop.f32.mrf.mxu0 }
  0xf6   :  { %730 = vmatpush3.xpose.msra.mxu0 %v169_v24  ;;  %v173_v29 = vadd.f32 %v172_v25, %v81_v22 }
  0xf7   :  { %v174_v27 = vpop.f32.mrf.mxu0  ;;  %734 = vmatprep.subr.mxu0 %v895_v0 }
  0xf8   :  { %v175_v28 = vadd.f32 %v174_v27, %v85_v20 }
  0xf9   :  { %732 = vmatmul.mubr.f32.vlgmr.msra.gmra.mxu0 %v167_v26  ;;  %v728_v32 = vpop.f32.mrf.mxu0 }
  0xfa   :  { %735 = vmatpush3.xpose.msra.mxu0 %v175_v28  ;;  %736 = vmatprep.mubr.msk.f32.mxu0 %vm896_vm1, %v895_v0  ;;  %v961_v33 = vadd.f32 %v728_v32, %v89_v31 }
  0xfb   :  { %739 = vmatprep.subr.mxu0 %v895_v0  ;;  %v243_v34 = vpop.f32.mrf.mxu0 }
  0xfc   :  { %v244_v35 = vadd.f32 %v243_v34, %v89_v31 }
  0xfd   :  { %737 = vmatmul.mubr.f32.vlgmr.msra.gmra.mxu0 %v173_v29 }
  0xfe   :  { %741 = vmatprep.mubr.msk.f32.mxu0 %vm896_vm1, %v895_v0  ;;  %740 = vmatpush3.msra.mxu0 %v244_v35 }
  0xff   :  { %744 = vmatprep.subr.mxu0 %v895_v0 }
 0x1b9   :  { %v318_v36 = vpop.f32.mrf.mxu0 }
 0x1ba   :  { %v393_v37 = vsel %vm392_vm2, %v318_v36, -inf }
 0x1bb   :  { %394 = vmax.xlane.f32.xlu0 %v393_v37  ;;  %v733_v38 = vpop.f32.mrf.mxu0 }
 0x1bd   :  { %v388_v39 = vpop.f32.mrf.mxu0 }
 0x1be   :  { %v396_v40 = vsel %vm392_vm2, %v388_v39, -inf }
 0x1bf   :  { %397 = vmax.xlane.f32.xlu0 %v396_v40  ;;  %v738_v41 = vpop.f32.mrf.mxu0 }
 0x244   :  { %v395_v42 = vpop.xlane.xlu0 %394 }
 0x245   :  { %v399_v43 = vsub.f32 %v318_v36, %v395_v42 }
 0x247   :  { %v401_v44 = vmul.f32 1.442695, %v399_v43 }
 0x248   :  { %v398_v45 = vpop.xlane.xlu0 %397 }
 0x249   :  { %794 = vpow2.f32 %v401_v44  ;;  %v400_v46 = vsub.f32 %v388_v39, %v398_v45 }
 0x24b   :  { %v403_v47 = vmul.f32 1.442695, %v400_v46 }
 0x24d   :  { %796 = vpow2.f32 %v403_v47 }
 0x256   :  { %v795_v48 = vpop.eup %794 }
 0x257   :  { %v405_v49 = vsel %vm392_vm2, %v795_v48, 0.0 }
 0x258   :  { %406 = vadd.xlane.f32.xlu1 %v405_v49 }
 0x25a   :  { %v797_v50 = vpop.eup %796 }
 0x25b   :  { %v408_v51 = vsel %vm392_vm2, %v797_v50, 0.0 }
 0x25c   :  { %409 = vadd.xlane.f32.xlu1 %v408_v51 }
 0x2e1   :  { %v407_v3 = vpop.xlane.xlu1 %406 }
 0x2e2   :  { %798 = vrcp.f32 %v407_v3 }
 0x2e5   :  { %v410_v4 = vpop.xlane.xlu1 %409 }
 0x2e6   :  { %800 = vrcp.f32 %v410_v4 }
 0x2ef   :  { %v799_v5 = vpop.eup %798 }
 0x2f0   :  { %v413_v6 = vmul.f32 %v799_v5, %v795_v48 }
 0x2f2   :  { %742 = vmatmul.mubr.msk.f32.vlgmr.msra.gmra.mxu0 %vm392_vm2, %v413_v6 }
 0x2f3   :  { %v801_v7 = vpop.eup %800  ;;  %745 = vmatpush3.msra.mxu0 %v961_v33  ;;  %746 = vmatprep.mubr.msk.f32.mxu0 %vm896_vm1, %v895_v0 }
 0x2f4   :  { %v414_v8 = vmul.f32 %v801_v7, %v797_v50 }
 0x2f6   :  { %747 = vmatmul.mubr.msk.f32.vlgmr.msra.gmra.mxu0 %vm392_vm2, %v414_v8 }
 0x3b2   :  { %v484_v11 = vpop.f32.mrf.mxu0 }
 0x3b3   :  { %781 = vmatprep.mubr.f32.mxu1 %v484_v11 }
 0x3b4   :  { %v743_v12 = vpop.f32.mrf.mxu0 }
 0x3b6   :  { %v557_v13 = vpop.f32.mrf.mxu0 }
 0x3b7   :  { %782 = vmatmul.mubr.f32.vlgmr.msra.gmra.mxu1 %v557_v13 }
 0x3b8   :  { %v748_v14 = vpop.f32.mrf.mxu0 }
 0x477   :  { %v783_v0 = vpop.f32.mrf.mxu1 }
 0x478   :  { %v656_v16 = vadd.f32 %v783_v0, %v685_v15 }
 0x479   :  { %v650_v17 = vpop.f32.mrf.mxu1 }
 0x47a   :  { %660 = vst [vmem:[#allocation8 + $0x8] sm:$0xff] %v656_v16  ;;  %v651_v18 = vadd.f32 %v685_v15, %v650_v17 }
 0x47c   :  { %659 = vst [vmem:[#allocation8] sm:$0xff] %v651_v18 }
 0x47d   :  { %873 = shalt.err (!%p870_p5)
}
 0x47e   :  { %672 = dma.vmem_to_hbm [thread:$0]  %s667_s13, 256, %s987_s5, [#allocation4], %s892_s28, %s892_s28, %s893_s29  }
 0x47f   :  { %886 = dma.done.wait [#allocation4], 256  }
 0x480   :  { %887 = vsyncadd [#allocation4], 4294967040 }
 0x481   :  { %676 = vsyncpa [#allocation3], 1 }
 0x482   :  { %677 = vsyncpa [#allocation6], 1 }
 0x483   :  { %678 = vsyncpa [#allocation4], 1 }

// kernel: tpu_custom_call.1
= control target key start
LH: loop header
LB: loop body
LE: loop exit
PB: predicated region body
PF: predicated region fallthrough
CT: control target
= control target key end

     0   :  { %10 = vsyncpa [#allocation3], 0  ;;  %s982_s0 = inlined_call_operand.hbm [shape: f32[2,8,32], index: 0, kind: input, shape index: {}]   ;;  %s983_s1 = inlined_call_operand.hbm [shape: f32[32,384], index: 1, kind: input, shape index: {}]   ;;  %s984_s2 = inlined_call_operand.vmem [shape: f32[1,384], index: 2, kind: input, shape index: {}]   ;;  %s985_s3 = inlined_call_operand.hbm [shape: f32[128,128], index: 3, kind: input, shape index: {}]   ;;  %s986_s4 = inlined_call_operand.vmem [shape: f32[1,128], index: 4, kind: input, shape index: {}]   ;;  %s987_s5 = inlined_call_operand.hbm [shape: f32[2,8,128], index: 5, kind: output, shape index: {}]  }
   0x1   :  { %11 = vsyncpa [#allocation6], 0 }
   0x2   :  { %12 = vsyncpa [#allocation4], 0  ;;  %s888_s18 = smov [#allocation5]  }
   0x3   :  { %s30_s19 = sshll.u32 %s888_s18, 4  ;;  %s31_s19 = int_to_ptr.vmem [resolvable:$true] %s30_s19 }
   0x4   :  { %s810_s20 = scalar_lea.vmem %s31_s19, 1536  ;;  %p815_p1 = scmp.lt.s32.totalorder %s31_s19, %s31_s19 }
   0x5   :  { %p811_p0 = scmp.ne.s32.totalorder %s31_s19, %s810_s20  ;;  %p816_p2 = scmp.lt.s32.totalorder %s810_s20, %s810_s20 }
   0x7   :  { %p817_p3 = por %p816_p2, %p815_p1 }
   0x9   :  { %p818_p4 = pnand %p817_p3, %p811_p0 }
   0xb   :  { %821 = shalt.err (!%p818_p4)
}
   0xc   :  { %s889_s21 = smov 384   ;;  %s890_s22 = smov 24  }
   0xd   :  { %36 = dma.hbm_to_vmem [thread:$0]  %s983_s1, 1536, %s31_s19, [#allocation6], %s889_s21, %s889_s21, %s890_s22  }
   0xe   :  { %s891_s25 = smov [#allocation2]  }
   0xf   :  { %s18_s26 = sshll.u32 %s891_s25, 4  ;;  %s19_s26 = int_to_ptr.vmem [resolvable:$true] %s18_s26 }
  0x10   :  { %s830_s27 = scalar_lea.vmem %s19_s26, 256  ;;  %p835_p6 = scmp.lt.s32.totalorder %s19_s26, %s19_s26 }
  0x11   :  { %p831_p5 = scmp.ne.s32.totalorder %s19_s26, %s830_s27  ;;  %p836_p7 = scmp.lt.s32.totalorder %s830_s27, %s830_s27 }
  0x13   :  { %p837_p8 = por %p836_p7, %p835_p6 }
  0x15   :  { %p838_p9 = pnand %p837_p8, %p831_p5 }
  0x17   :  { %841 = shalt.err (!%p838_p9)
}
  0x18   :  { %s892_s28 = smov 128   ;;  %s893_s29 = smov 8  }
  0x19   :  { %24 = dma.hbm_to_vmem [thread:$0]  %s982_s0, 256, %s19_s26, [#allocation3], %s892_s28, %s892_s28, %s893_s29  }
  0x1a   :  { %s894_s1 = smov [#allocation7]  }
  0x1b   :  { %s44_s7 = sshll.u32 %s894_s1, 4  ;;  %s45_s7 = int_to_ptr.vmem [resolvable:$true] %s44_s7 }
  0x1c   :  { %s850_s8 = scalar_lea.vmem %s45_s7, 2048  ;;  %p855_p11 = scmp.lt.s32.totalorder %s45_s7, %s45_s7 }
  0x1d   :  { %p851_p10 = scmp.ne.s32.totalorder %s45_s7, %s850_s8  ;;  %p856_p12 = scmp.lt.s32.totalorder %s850_s8, %s850_s8 }
  0x1f   :  { %p857_p13 = por %p856_p12, %p855_p11 }
  0x21   :  { %p858_p0 = pnand %p857_p13, %p851_p10 }
  0x23   :  { %861 = shalt.err (!%p858_p0)
}
  0x24   :  { %50 = dma.hbm_to_vmem [thread:$0]  %s985_s3, 2048, %s45_s7, [#allocation6], %s892_s28, %s892_s28, %s893_s29  }
  0x25   :  { %882 = dma.done.wait [#allocation3], 256  }
  0x26   :  { %883 = vsyncadd [#allocation3], 4294967040 }
  0x27   :  { %884 = dma.done.wait [#allocation6], 3584  }
  0x28   :  { %885 = vsyncadd [#allocation6], 4294963712  ;;  %v895_v0 = vmov 0.0   ;;  %v74_v1 = vld [vmem:[#allocation5 + $0x50] sm:$0xff]  ;;  %v73_v2 = vld [vmem:[#allocation5 + $0x48] sm:$0xff]  ;;  %vm93_vm0 = vcmask 261120   ;;  %v78_v15 = vlaneseq }
  0x29   :  { %164 = vmatprep.mubr.f32.mxu0 %v895_v0  ;;  %v71_v3 = vld [vmem:[#allocation5 + $0x38] sm:$0xff]  ;;  %124 = vmatprep.subr.mxu0 %v74_v1  ;;  %v70_v4 = vld [vmem:[#allocation5 + $0x30] sm:$0xff]  ;;  %v68_v5 = vld [vmem:[#allocation5 + $0x20] sm:$0xff]  ;;  %vm896_vm1 = vmmov 0   ;;  %vm392_vm2 = vcmask 64512   ;;  %s897_s12 = smov [#allocation8]  }
  0x2a   :  { %125 = vmatpush1.msra.mxu0 %v73_v2  ;;  %v67_v6 = vld [vmem:[#allocation5 + $0x18] sm:$0xff]  ;;  %v65_v7 = vld [vmem:[#allocation5 + $0x8] sm:$0xff]  ;;  %v64_v8 = vld [vmem:[#allocation5] sm:$0xff]  ;;  %v79_v16 = vshrl.u32 %v78_v15, 7  ;;  %s666_s13 = sshll.u32 %s897_s12, 4  ;;  %s667_s13 = int_to_ptr.vmem [resolvable:$true] %s666_s13 }
  0x2b   :  { %126 = vmatprep.subr.mxu0 %v71_v3  ;;  %v62_v9 = vld [vmem:[#allocation2] sm:$0xff]  ;;  %v75_v10 = vld [vmem:[#allocation5 + $0x58] sm:$0xff]  ;;  %v72_v11 = vld [vmem:[#allocation5 + $0x40] sm:$0xff]  ;;  %s862_s14 = scalar_lea.vmem %s667_s13, 256  ;;  %p867_p2 = scmp.lt.s32.totalorder %s667_s13, %s667_s13 }
  0x2c   :  { %127 = vmatpush1.msra.mxu0 %v70_v4  ;;  %v63_v12 = vld [vmem:[#allocation2 + $0x8] sm:$0xff]  ;;  %v69_v13 = vld [vmem:[#allocation5 + $0x28] sm:$0xff]  ;;  %v66_v14 = vld [vmem:[#allocation5 + $0x10] sm:$0xff]  ;;  %v84_v17 = vsub.s32 1, %v79_v16  ;;  %v80_v19 = vsub.s32 0, %v79_v16  ;;  %v88_v30 = vsub.s32 2, %v79_v16  ;;  %p863_p1 = scmp.ne.s32.totalorder %s667_s13, %s862_s14  ;;  %p868_p3 = scmp.lt.s32.totalorder %s862_s14, %s862_s14 }
  0x2d   :  { %128 = vmatprep.subr.mxu0 %v68_v5  ;;  %v76_v18 = vld [vmem:[%s984_s2] sm:$0x7]  ;;  %v576_v52 = vld [vmem:[#allocation7 + $0x78] sm:$0xff]  ;;  %v574_v54 = vld [vmem:[#allocation7 + $0x68] sm:$0xff] }
  0x2e   :  { %129 = vmatpush1.msra.mxu0 %v67_v6  ;;  %v85_v20 = vrot.slane %v76_v18, %v84_v17  ;;  %v81_v22 = vrot.slane %v76_v18, %v80_v19  ;;  %v89_v31 = vrot.slane %v76_v18, %v88_v30  ;;  %v575_v53 = vld [vmem:[#allocation7 + $0x70] sm:$0xff]  ;;  %749 = vmatprep.subr.mxu1 %v576_v52  ;;  %v573_v55 = vld [vmem:[#allocation7 + $0x60] sm:$0xff]  ;;  %v572_v56 = vld [vmem:[#allocation7 + $0x58] sm:$0xff]  ;;  %p869_p4 = por %p868_p3, %p867_p2 }
  0x2f   :  { %130 = vmatprep.subr.mxu0 %v65_v7  ;;  %750 = vmatpush3.msra.mxu1 %v576_v52  ;;  %v571_v57 = vld [vmem:[#allocation7 + $0x50] sm:$0xff]  ;;  %v570_v58 = vld [vmem:[#allocation7 + $0x48] sm:$0xff]  ;;  %v569_v59 = vld [vmem:[#allocation7 + $0x40] sm:$0xff] }
  0x30   :  { %131 = vmatpush1.msra.mxu0 %v64_v8  ;;  %751 = vmatprep.subr.mxu1 %v575_v53  ;;  %v568_v60 = vld [vmem:[#allocation7 + $0x38] sm:$0xff]  ;;  %v567_v61 = vld [vmem:[#allocation7 + $0x30] sm:$0xff]  ;;  %v566_v62 = vld [vmem:[#allocation7 + $0x28] sm:$0xff]  ;;  %p870_p5 = pnand %p869_p4, %p863_p1 }
  0x31   :  { %679 = vmatmul.mubr.msk.f32.vlgmr.msra.gmra.mxu0 %vm93_vm0, %v62_v9  ;;  %718 = vmatprep.subr.mxu0 %v75_v10  ;;  %v565_v63 = vld [vmem:[#allocation7 + $0x20] sm:$0xff]  ;;  %v564_v1 = vld [vmem:[#allocation7 + $0x18] sm:$0xff]  ;;  %v563_v2 = vld [vmem:[#allocation7 + $0x10] sm:$0xff] }
  0x32   :  { %170 = vmatprep.mubr.f32.mxu0 %v895_v0  ;;  %719 = vmatpush3.msra.mxu0 %v75_v10  ;;  %v561_v10 = vld [vmem:[#allocation7] sm:$0xff]  ;;  %v685_v15 = vld [vmem:[%s986_s4] ss:$0 sm:$0xff] }
  0x33   :  { %720 = vmatprep.subr.mxu0 %v72_v11  ;;  %752 = vmatpush3.msra.mxu1 %v575_v53 }
  0x34   :  { %721 = vmatpush3.msra.mxu0 %v72_v11  ;;  %753 = vmatprep.subr.mxu1 %v574_v54 }
  0x35   :  { %680 = vmatmul.mubr.msk.f32.gmra.mxu0 %vm93_vm0, %v63_v12  ;;  %722 = vmatprep.subr.mxu0 %v69_v13 }
  0x36   :  { %723 = vmatpush3.msra.mxu0 %v69_v13  ;;  %726 = vmatprep.mubr.msk.f32.mxu0 %vm93_vm0, %v62_v9  ;;  %v562_v9 = vld [vmem:[#allocation7 + $0x8] sm:$0xff] }
  0x37   :  { %724 = vmatprep.subr.mxu0 %v66_v14  ;;  %754 = vmatpush3.msra.mxu1 %v574_v54 }
  0x38   :  { %725 = vmatpush3.msra.mxu0 %v66_v14  ;;  %755 = vmatprep.subr.mxu1 %v573_v55 }
  0x39   :  { %727 = vmatmul.mubr.msk.f32.vlgmr.msra.gmra.mxu0 %vm93_vm0, %v63_v12  ;;  %729 = vmatprep.subr.mxu0 %v895_v0 }
  0x3a   :  { %731 = vmatprep.mubr.msk.f32.mxu0 %vm896_vm1, %v895_v0  ;;  %756 = vmatpush3.msra.mxu1 %v573_v55 }
  0x3b   :  { %757 = vmatprep.subr.mxu1 %v572_v56 }
  0x3c   :  { %758 = vmatpush3.msra.mxu1 %v572_v56 }
  0x3d   :  { %759 = vmatprep.subr.mxu1 %v571_v57 }
  0x3e   :  { %760 = vmatpush3.msra.mxu1 %v571_v57 }
  0x3f   :  { %761 = vmatprep.subr.mxu1 %v570_v58 }
  0x40   :  { %762 = vmatpush3.msra.mxu1 %v570_v58 }
  0x41   :  { %763 = vmatprep.subr.mxu1 %v569_v59 }
  0x42   :  { %764 = vmatpush3.msra.mxu1 %v569_v59 }
  0x43   :  { %765 = vmatprep.subr.mxu1 %v568_v60 }
  0x44   :  { %766 = vmatpush3.msra.mxu1 %v568_v60 }
  0x45   :  { %767 = vmatprep.subr.mxu1 %v567_v61 }
  0x46   :  { %768 = vmatpush3.msra.mxu1 %v567_v61 }
  0x47   :  { %769 = vmatprep.subr.mxu1 %v566_v62 }
  0x48   :  { %770 = vmatpush3.msra.mxu1 %v566_v62 }
  0x49   :  { %771 = vmatprep.subr.mxu1 %v565_v63 }
  0x4a   :  { %772 = vmatpush3.msra.mxu1 %v565_v63 }
  0x4b   :  { %773 = vmatprep.subr.mxu1 %v564_v1 }
  0x4c   :  { %774 = vmatpush3.msra.mxu1 %v564_v1 }
  0x4d   :  { %775 = vmatprep.subr.mxu1 %v563_v2 }
  0x4e   :  { %776 = vmatpush3.msra.mxu1 %v563_v2 }
  0x4f   :  { %777 = vmatprep.subr.mxu1 %v562_v9 }
  0x50   :  { %778 = vmatpush3.msra.mxu1 %v562_v9 }
  0x51   :  { %779 = vmatprep.subr.mxu1 %v561_v10 }
  0x52   :  { %780 = vmatpush3.msra.mxu1 %v561_v10 }
  0xf1   :  { %v166_v21 = vpop.f32.mrf.mxu0 }
  0xf2   :  { %v167_v26 = vadd.f32 %v166_v21, %v81_v22 }
  0xf3   :  { %v168_v23 = vpop.f32.mrf.mxu0 }
  0xf4   :  { %v169_v24 = vadd.f32 %v168_v23, %v85_v20 }
  0xf5   :  { %v172_v25 = vpop.f32.mrf.mxu0 }
  0xf6   :  { %730 = vmatpush3.xpose.msra.mxu0 %v169_v24  ;;  %v173_v29 = vadd.f32 %v172_v25, %v81_v22 }
  0xf7   :  { %v174_v27 = vpop.f32.mrf.mxu0  ;;  %734 = vmatprep.subr.mxu0 %v895_v0 }
  0xf8   :  { %v175_v28 = vadd.f32 %v174_v27, %v85_v20 }
  0xf9   :  { %732 = vmatmul.mubr.f32.vlgmr.msra.gmra.mxu0 %v167_v26  ;;  %v728_v32 = vpop.f32.mrf.mxu0 }
  0xfa   :  { %735 = vmatpush3.xpose.msra.mxu0 %v175_v28  ;;  %736 = vmatprep.mubr.msk.f32.mxu0 %vm896_vm1, %v895_v0  ;;  %v961_v33 = vadd.f32 %v728_v32, %v89_v31 }
  0xfb   :  { %739 = vmatprep.subr.mxu0 %v895_v0  ;;  %v243_v34 = vpop.f32.mrf.mxu0 }
  0xfc   :  { %v244_v35 = vadd.f32 %v243_v34, %v89_v31 }
  0xfd   :  { %737 = vmatmul.mubr.f32.vlgmr.msra.gmra.mxu0 %v173_v29 }
  0xfe   :  { %741 = vmatprep.mubr.msk.f32.mxu0 %vm896_vm1, %v895_v0  ;;  %740 = vmatpush3.msra.mxu0 %v244_v35 }
  0xff   :  { %744 = vmatprep.subr.mxu0 %v895_v0 }
 0x1b9   :  { %v318_v36 = vpop.f32.mrf.mxu0 }
 0x1ba   :  { %v393_v37 = vsel %vm392_vm2, %v318_v36, -inf }
 0x1bb   :  { %394 = vmax.xlane.f32.xlu0 %v393_v37  ;;  %v733_v38 = vpop.f32.mrf.mxu0 }
 0x1bd   :  { %v388_v39 = vpop.f32.mrf.mxu0 }
 0x1be   :  { %v396_v40 = vsel %vm392_vm2, %v388_v39, -inf }
 0x1bf   :  { %397 = vmax.xlane.f32.xlu0 %v396_v40  ;;  %v738_v41 = vpop.f32.mrf.mxu0 }
 0x244   :  { %v395_v42 = vpop.xlane.xlu0 %394 }
 0x245   :  { %v399_v43 = vsub.f32 %v318_v36, %v395_v42 }
 0x247   :  { %v401_v44 = vmul.f32 1.442695, %v399_v43 }
 0x248   :  { %v398_v45 = vpop.xlane.xlu0 %397 }
 0x249   :  { %794 = vpow2.f32 %v401_v44  ;;  %v400_v46 = vsub.f32 %v388_v39, %v398_v45 }
 0x24b   :  { %v403_v47 = vmul.f32 1.442695, %v400_v46 }
 0x24d   :  { %796 = vpow2.f32 %v403_v47 }
 0x256   :  { %v795_v48 = vpop.eup %794 }
 0x257   :  { %v405_v49 = vsel %vm392_vm2, %v795_v48, 0.0 }
 0x258   :  { %406 = vadd.xlane.f32.xlu1 %v405_v49 }
 0x25a   :  { %v797_v50 = vpop.eup %796 }
 0x25b   :  { %v408_v51 = vsel %vm392_vm2, %v797_v50, 0.0 }
 0x25c   :  { %409 = vadd.xlane.f32.xlu1 %v408_v51 }
 0x2e1   :  { %v407_v3 = vpop.xlane.xlu1 %406 }
 0x2e2   :  { %798 = vrcp.f32 %v407_v3 }
 0x2e5   :  { %v410_v4 = vpop.xlane.xlu1 %409 }
 0x2e6   :  { %800 = vrcp.f32 %v410_v4 }
 0x2ef   :  { %v799_v5 = vpop.eup %798 }
 0x2f0   :  { %v413_v6 = vmul.f32 %v799_v5, %v795_v48 }
 0x2f2   :  { %742 = vmatmul.mubr.msk.f32.vlgmr.msra.gmra.mxu0 %vm392_vm2, %v413_v6 }
 0x2f3   :  { %v801_v7 = vpop.eup %800  ;;  %745 = vmatpush3.msra.mxu0 %v961_v33  ;;  %746 = vmatprep.mubr.msk.f32.mxu0 %vm896_vm1, %v895_v0 }
 0x2f4   :  { %v414_v8 = vmul.f32 %v801_v7, %v797_v50 }
 0x2f6   :  { %747 = vmatmul.mubr.msk.f32.vlgmr.msra.gmra.mxu0 %vm392_vm2, %v414_v8 }
 0x3b2   :  { %v484_v11 = vpop.f32.mrf.mxu0 }
 0x3b3   :  { %781 = vmatprep.mubr.f32.mxu1 %v484_v11 }
 0x3b4   :  { %v743_v12 = vpop.f32.mrf.mxu0 }
 0x3b6   :  { %v557_v13 = vpop.f32.mrf.mxu0 }
 0x3b7   :  { %782 = vmatmul.mubr.f32.vlgmr.msra.gmra.mxu1 %v557_v13 }
 0x3b8   :  { %v748_v14 = vpop.f32.mrf.mxu0 }
 0x477   :  { %v783_v0 = vpop.f32.mrf.mxu1 }
 0x478   :  { %v656_v16 = vadd.f32 %v783_v0, %v685_v15 }
 0x479   :  { %v650_v17 = vpop.f32.mrf.mxu1 }
 0x47a   :  { %660 = vst [vmem:[#allocation8 + $0x8] sm:$0xff] %v656_v16  ;;  %v651_v18 = vadd.f32 %v685_v15, %v650_v17 }
 0x47c   :  { %659 = vst [vmem:[#allocation8] sm:$0xff] %v651_v18 }
 0x47d   :  { %873 = shalt.err (!%p870_p5)
}
 0x47e   :  { %672 = dma.vmem_to_hbm [thread:$0]  %s667_s13, 256, %s987_s5, [#allocation4], %s892_s28, %s892_s28, %s893_s29  }
 0x47f   :  { %886 = dma.done.wait [#allocation4], 256  }
 0x480   :  { %887 = vsyncadd [#allocation4], 4294967040 }
 0x481   :  { %676 = vsyncpa [#allocation3], 1 }
 0x482   :  { %677 = vsyncpa [#allocation6], 1 }
 0x483   :  { %678 = vsyncpa [#allocation4], 1 }

</bundles_post_ra>
